<compile_context>
chip_gen: v7x
topology: tpu7x:2x2x1
jax: 0.10.0
libtpu: 0.0.40
codegen_flags: <defaults>
</compile_context>

<pallas_src>
import functools

import jax
import jax.numpy as jnp
from jax.experimental import pallas as pl
from jax.experimental.pallas import tpu as pltpu

_EPS = 1e-5
_TRANS_B = (((1,), (1,)), ((), ()))   # contract last dims: (M,K)x(N,K)->(M,N)


def _layernorm_f32(x, w, b, eps):
    # x: (R, D) f32;  w, b: (1, D) f32 (broadcast).
    mu = jnp.mean(x, axis=-1, keepdims=True)
    var = jnp.mean((x - mu) ** 2, axis=-1, keepdims=True)
    return (x - mu) * jax.lax.rsqrt(var + eps) * w + b


# ---------------- kernel A: ln_1 + QKV projection (flat layout) --------------
def _ln_qkv_kernel(x_ref, ln1_w_ref, ln1_b_ref, wq_ref, wk_ref, wv_ref,
                   q_ref, k_ref, v_ref, *, eps):
    x = x_ref[0].astype(jnp.float32)                                  # (TR, D)
    h = _layernorm_f32(x, ln1_w_ref[...], ln1_b_ref[...], eps)
    h = h.astype(jnp.bfloat16)                                        # MXU operand
    q_ref[0] = jnp.dot(h, wq_ref[...],
                       preferred_element_type=jnp.float32).astype(q_ref.dtype)
    k_ref[0] = jnp.dot(h, wk_ref[...],
                       preferred_element_type=jnp.float32).astype(k_ref.dtype)
    v_ref[0] = jnp.dot(h, wv_ref[...],
                       preferred_element_type=jnp.float32).astype(v_ref.dtype)


# ---- kernel B: attention + proj + residual + ln_2 + GEGLU FFN + residual ----
def _attn_ffn_kernel(x_ref, q_ref, k_ref, v_ref, wp_ref, bp_ref,
                     ln2_w_ref, ln2_b_ref,
                     w1v_ref, b1v_ref, w1g_ref, b1g_ref, w2_ref, b2_ref,
                     *out_and_scratch,
                     num_heads, head_dim, tq, eps, with_attn_weights):
    if with_attn_weights:
        out_ref, attnw_ref, o_scratch = out_and_scratch
    else:
        out_ref, o_scratch = out_and_scratch
        attnw_ref = None

    qi = pl.program_id(1)
    x = x_ref[0].astype(jnp.float32)                                  # (TQ, D) residual
    n_kv = k_ref.shape[1]

    # Causal mask for this query tile (global row = qi*tq + local row).
    rows = jax.lax.broadcasted_iota(jnp.int32, (tq, n_kv), 0) + qi * tq
    cols = jax.lax.broadcasted_iota(jnp.int32, (tq, n_kv), 1)
    causal = rows >= cols
    neg = jnp.finfo(jnp.float32).min
    scale = 1.0 / jnp.sqrt(jnp.float32(head_dim))

    # Per-head attention: only a (TQ, N) f32 score block is live at a time;
    # per-head contexts land in a flat (TQ, D) f32 scratch (no head relayout).
    for h in range(num_heads):                       # static unroll over heads
        lo = h * head_dim
        q_h = q_ref[0, :, lo:lo + head_dim]          # (TQ, hd) bf16
        k_h = k_ref[0, :, lo:lo + head_dim]          # (N,  hd) bf16
        v_h = v_ref[0, :, lo:lo + head_dim]          # (N,  hd) bf16
        s = jax.lax.dot_general(q_h, k_h, _TRANS_B,
                                preferred_element_type=jnp.float32) * scale
        s = jnp.where(causal, s, neg)
        s = s - jnp.max(s, axis=-1, keepdims=True)
        p = jnp.exp(s)
        p = p * pl.reciprocal(jnp.sum(p, axis=-1, keepdims=True))     # exact recip (EUP)
        if attnw_ref is not None:
            attnw_ref[0, h] = p.astype(attnw_ref.dtype)
        o_scratch[:, lo:lo + head_dim] = jnp.dot(
            p.astype(jnp.bfloat16), v_h, preferred_element_type=jnp.float32)

    # Single output projection with contraction K = D (fills the MXU).
    attn_out = jnp.dot(o_scratch[...].astype(jnp.bfloat16), wp_ref[...],
                       preferred_element_type=jnp.float32) + bp_ref[...]
    h1 = x + attn_out                                                 # residual 1

    # ln_2 + GEGLU feed-forward (value/gate halves pre-split in the wrapper).
    h2 = _layernorm_f32(h1, ln2_w_ref[...], ln2_b_ref[...], eps).astype(jnp.bfloat16)
    a = jnp.dot(h2, w1v_ref[...], preferred_element_type=jnp.float32) + b1v_ref[...]
    g = jnp.dot(h2, w1g_ref[...], preferred_element_type=jnp.float32) + b1g_ref[...]
    ff = (a * jax.nn.gelu(g, approximate=False)).astype(jnp.bfloat16)
    ff = jnp.dot(ff, w2_ref[...], preferred_element_type=jnp.float32) + b2_ref[...]

    out_ref[0] = (h1 + ff).astype(out_ref.dtype)                      # residual 2


# ------------------------------ wrapper --------------------------------------
def _vmem_budget():
    """Generation-aware VMEM budget (~48 MiB on v7x, ~96 MiB on v5e/v6e)."""
    try:
        cap = int(pltpu.get_tpu_info().vmem_capacity_bytes)
    except Exception:
        cap = 128 << 20
    return int(min(cap * 3 // 4, 100 << 20))


def _tile_candidates(n):
    cands = [t for t in (1024, 512, 256, 128) if t <= n and n % t == 0]
    return cands or [n]


def _pick_tile(n, batch, live_fn, budget):
    cands = _tile_candidates(n)                      # descending
    if batch == 1:                                   # megacore: >= 2 parallel steps
        multi = [t for t in cands if n // t >= 2]
        if multi:
            cands = multi
    for t in cands:
        if live_fn(t) <= budget:
            return t
    return cands[-1]


def block_forward(x, params, *, num_heads,
                  attn_weights_dtype=jnp.bfloat16,
                  return_attention_weights=True):
    B, N, D = x.shape
    assert D % num_heads == 0
    hd = D // num_heads
    inner = params["w2_t"].shape[0]

    # One-time bf16 weight prep for the MXU (XLA, outside the kernels).
    wqkv = params["wqkv_t"]
    wq = wqkv[:, :D].astype(jnp.bfloat16)
    wk = wqkv[:, D:2 * D].astype(jnp.bfloat16)
    wv = wqkv[:, 2 * D:].astype(jnp.bfloat16)
    wp = params["wp_t"].astype(jnp.bfloat16)
    w1v = params["w1_t"][:, :inner].astype(jnp.bfloat16)
    w1g = params["w1_t"][:, inner:].astype(jnp.bfloat16)
    b1v = params["b1"][:, :inner]
    b1g = params["b1"][:, inner:]
    w2 = params["w2_t"].astype(jnp.bfloat16)

    budget = _vmem_budget()
    attn_bytes = jnp.dtype(attn_weights_dtype).itemsize if return_attention_weights else 0

    def inv(shape, imap):
        # Grid-invariant (or batch-only-varying) block: single pipeline buffer.
        return pl.BlockSpec(shape, imap, pipeline_mode=pl.Buffered(1))

    # ---------------- call A: ln_1 + QKV projection ----------------
    def live_a(tr):
        fixed = 3 * D * D * 2 + 4 * D * 4                       # Wq/Wk/Wv + LN params
        varying = 2 * (tr * D * 4 + 3 * tr * D * 2)             # x in + q/k/v out (2-buf)
        work = 3 * tr * D * 4                                   # f32 temporaries
        return fixed + varying + work

    tr = _pick_tile(N, B, live_a, budget)

    q, k, v = pl.pallas_call(
        functools.partial(_ln_qkv_kernel, eps=_EPS),
        out_shape=tuple(jax.ShapeDtypeStruct((B, N, D), jnp.bfloat16) for _ in range(3)),
        grid_spec=pltpu.PrefetchScalarGridSpec(
            num_scalar_prefetch=0,
            grid=(B, N // tr),
            in_specs=[
                pl.BlockSpec((1, tr, D), lambda b, r: (b, r, 0)),     # x
                inv((1, D), lambda b, r: (0, 0)),                     # ln1 w
                inv((1, D), lambda b, r: (0, 0)),                     # ln1 b
                inv((D, D), lambda b, r: (0, 0)),                     # Wq
                inv((D, D), lambda b, r: (0, 0)),                     # Wk
                inv((D, D), lambda b, r: (0, 0)),                     # Wv
            ],
            out_specs=tuple(pl.BlockSpec((1, tr, D), lambda b, r: (b, r, 0))
                            for _ in range(3)),
        ),
        compiler_params=pltpu.CompilerParams(
            dimension_semantics=("parallel", "parallel"),
            vmem_limit_bytes=budget),
    )(x, params["ln1_w"], params["ln1_b"], wq, wk, wv)

    # ---------------- call B: attention + proj + ln_2 + GEGLU FFN ----------------
    def live_b(tq):
        fixed = (2 * N * D * 2                # K, V (single buffer)
                 + D * D * 2                  # Wp
                 + 3 * D * inner * 2          # W1v, W1g, W2
                 + 8 * max(D, inner) * 4)     # bias / LN vectors
        varying = 2 * (tq * D * 4 + tq * D * 2 + tq * D * 4)    # x, q in + out (2-buf)
        if return_attention_weights:
            varying += 2 * num_heads * tq * N * attn_bytes      # attn-weights out (2-buf)
        work = (2 * tq * N * 4                # per-head scores / probs (f32)
                + tq * D * 4                  # context scratch
                + 3 * tq * D * 4              # attn_out / h1 / h2 temporaries
                + 3 * tq * inner * 4)         # a / g / ff
        return fixed + varying + work

    tq = _pick_tile(N, B, live_b, budget)

    out_shapes = [jax.ShapeDtypeStruct((B, N, D), jnp.float32)]
    out_specs = [pl.BlockSpec((1, tq, D), lambda b, qi: (b, qi, 0))]
    if return_attention_weights:
        out_shapes.append(
            jax.ShapeDtypeStruct((B, num_heads, N, N), attn_weights_dtype))
        out_specs.append(
            pl.BlockSpec((1, num_heads, tq, N), lambda b, qi: (b, 0, qi, 0)))

    results = pl.pallas_call(
        functools.partial(_attn_ffn_kernel, num_heads=num_heads, head_dim=hd,
                          tq=tq, eps=_EPS,
                          with_attn_weights=return_attention_weights),
        out_shape=tuple(out_shapes),
        grid_spec=pltpu.PrefetchScalarGridSpec(
            num_scalar_prefetch=0,
            grid=(B, N // tq),
            in_specs=[
                pl.BlockSpec((1, tq, D), lambda b, qi: (b, qi, 0)),   # x (residual)
                pl.BlockSpec((1, tq, D), lambda b, qi: (b, qi, 0)),   # q tile
                inv((1, N, D), lambda b, qi: (b, 0, 0)),              # k (per batch)
                inv((1, N, D), lambda b, qi: (b, 0, 0)),              # v (per batch)
                inv((D, D), lambda b, qi: (0, 0)),                    # Wproj
                inv((1, D), lambda b, qi: (0, 0)),                    # bproj
                inv((1, D), lambda b, qi: (0, 0)),                    # ln2 w
                inv((1, D), lambda b, qi: (0, 0)),                    # ln2 b
                inv((D, inner), lambda b, qi: (0, 0)),                # W1 value half
                inv((1, inner), lambda b, qi: (0, 0)),                # b1 value half
                inv((D, inner), lambda b, qi: (0, 0)),                # W1 gate half
                inv((1, inner), lambda b, qi: (0, 0)),                # b1 gate half
                inv((inner, D), lambda b, qi: (0, 0)),                # W2
                inv((1, D), lambda b, qi: (0, 0)),                    # b2
            ],
            out_specs=tuple(out_specs),
            scratch_shapes=[pltpu.VMEM((tq, D), jnp.float32)],        # flat context
        ),
        compiler_params=pltpu.CompilerParams(
            dimension_semantics=("parallel", "parallel"),
            vmem_limit_bytes=budget),
    )(x, q, k, v, wp, params["bp"], params["ln2_w"], params["ln2_b"],
      w1v, b1v, w1g, b1g, w2, params["b2"])

    if return_attention_weights:
        out, attn_w = results
        return out, attn_w
    (out,) = results
    return out, None


# ------------------------------ reference ------------------------------------
def reference_forward(x, params, *, num_heads):
    """Pure-JAX (f32) reference mirroring the PyTorch Block forward."""
    B, N, D = x.shape
    hd = D // num_heads

    def ln(h, w, b):
        mu = h.mean(-1, keepdims=True)
        var = ((h - mu) ** 2).mean(-1, keepdims=True)
        return (h - mu) / jnp.sqrt(var + _EPS) * w[0] + b[0]

    h = ln(x, params["ln1_w"], params["ln1_b"])
    qkv = h @ params["wqkv_t"]
    q, k, v = jnp.split(qkv, 3, axis=-1)
    to_heads = lambda t: t.reshape(B, N, num_heads, hd).transpose(0, 2, 1, 3)
    q, k, v = to_heads(q), to_heads(k), to_heads(v)
    s = (q @ k.transpose(0, 1, 3, 2)) / jnp.sqrt(jnp.float32(hd))
    mask = jnp.tril(jnp.ones((N, N), dtype=bool))
    s = jnp.where(mask, s, jnp.finfo(jnp.float32).min)
    p = jax.nn.softmax(s, axis=-1)
    o = (p @ v).transpose(0, 2, 1, 3).reshape(B, N, D)
    o = o @ params["wp_t"] + params["bp"][0]
    h1 = x + o
    h2 = ln(h1, params["ln2_w"], params["ln2_b"])
    u = h2 @ params["w1_t"] + params["b1"][0]
    a, g = jnp.split(u, 2, axis=-1)
    ff = (a * jax.nn.gelu(g, approximate=False)) @ params["w2_t"] + params["b2"][0]
    return h1 + ff, p


def init_params(key, hidden, num_heads, ff_mult=4):
    inner = hidden * ff_mult
    ks = jax.random.split(key, 6)
    scale = 0.02
    return {
        "ln1_w": jnp.ones((1, hidden), jnp.float32),
        "ln1_b": jnp.zeros((1, hidden), jnp.float32),
        "wqkv_t": scale * jax.random.normal(ks[0], (hidden, 3 * hidden), jnp.float32),
        "wp_t": scale * jax.random.normal(ks[1], (hidden, hidden), jnp.float32),
        "bp": scale * jax.random.normal(ks[2], (1, hidden), jnp.float32),
        "ln2_w": jnp.ones((1, hidden), jnp.float32),
        "ln2_b": jnp.zeros((1, hidden), jnp.float32),
        "w1_t": scale * jax.random.normal(ks[3], (hidden, 2 * inner), jnp.float32),
        "b1": scale * jax.random.normal(ks[4], (1, 2 * inner), jnp.float32),
        "w2_t": scale * jax.random.normal(ks[5], (inner, hidden), jnp.float32),
        "b2": jnp.zeros((1, hidden), jnp.float32),
    }


if __name__ == "__main__":
    # Small shapes: batch=2, seq=8, hidden=128, heads=4 (head_dim=32).
    B, N, D, H = 2, 8, 128, 4

    key = jax.random.PRNGKey(0)
    k_x, k_p = jax.random.split(key)
    x = jax.random.normal(k_x, (B, N, D), jnp.float32)
    params = init_params(k_p, D, H)

    out, attn_w = block_forward(x, params, num_heads=H)
    out = jax.block_until_ready(out)
    attn_w = jax.block_until_ready(attn_w)

    ref_out, ref_attn = reference_forward(x, params, num_heads=H)
    # bf16 MXU operands + bf16 attention-weight output -> bf16-level tolerance.
    assert jnp.allclose(out, ref_out, atol=2e-2, rtol=2e-2), "output mismatch"
    assert jnp.allclose(attn_w.astype(jnp.float32), ref_attn,
                        atol=2e-2, rtol=2e-2), "attn mismatch"

    print("KERNEL_OK")
</pallas_src>

<mosaic_0001>
module attributes {stable_mosaic.version = 11 : i64} {
  func.func @_ln_qkv_kernel(%arg0: i32, %arg1: i32, %arg2: memref<1x8x128xf32, #tpu.memory_space<vmem>>, %arg3: memref<1x128xf32, #tpu.memory_space<vmem>>, %arg4: memref<1x128xf32, #tpu.memory_space<vmem>>, %arg5: memref<128x128xbf16, #tpu.memory_space<vmem>>, %arg6: memref<128x128xbf16, #tpu.memory_space<vmem>>, %arg7: memref<128x128xbf16, #tpu.memory_space<vmem>>, %arg8: memref<1x8x128xbf16, #tpu.memory_space<vmem>>, %arg9: memref<1x8x128xbf16, #tpu.memory_space<vmem>>, %arg10: memref<1x8x128xbf16, #tpu.memory_space<vmem>>) attributes {dimension_semantics = [#tpu.dimension_semantics<parallel>, #tpu.dimension_semantics<parallel>], iteration_bounds = array<i64: 2, 1>, scalar_prefetch = 0 : i64, scratch_operands = 0 : i64, tpu.core_type = #tpu.core_type<tc>, window_params = [{transform_indices = @transform_0, window_bounds = array<i64: 1, 8, 128>}, {pipeline_mode = #tpu.pipeline_mode<synchronous>, transform_indices = @transform_1, window_bounds = array<i64: 1, 128>}, {pipeline_mode = #tpu.pipeline_mode<synchronous>, transform_indices = @transform_2, window_bounds = array<i64: 1, 128>}, {pipeline_mode = #tpu.pipeline_mode<synchronous>, transform_indices = @transform_3, window_bounds = array<i64: 128, 128>}, {pipeline_mode = #tpu.pipeline_mode<synchronous>, transform_indices = @transform_4, window_bounds = array<i64: 128, 128>}, {pipeline_mode = #tpu.pipeline_mode<synchronous>, transform_indices = @transform_5, window_bounds = array<i64: 128, 128>}, {transform_indices = @transform_6, window_bounds = array<i64: 1, 8, 128>}, {transform_indices = @transform_7, window_bounds = array<i64: 1, 8, 128>}, {transform_indices = @transform_8, window_bounds = array<i64: 1, 8, 128>}]} {
    %c0 = arith.constant 0 : index
    %c0_0 = arith.constant 0 : index
    %c0_1 = arith.constant 0 : index
    %0 = vector.load %arg2[%c0, %c0_0, %c0_1] : memref<1x8x128xf32, #tpu.memory_space<vmem>>, vector<1x8x128xf32>
    %1 = vector.shape_cast %0 : vector<1x8x128xf32> to vector<8x128xf32>
    %c0_2 = arith.constant 0 : index
    %c0_3 = arith.constant 0 : index
    %2 = vector.load %arg3[%c0_2, %c0_3] : memref<1x128xf32, #tpu.memory_space<vmem>>, vector<1x128xf32>
    %c0_4 = arith.constant 0 : index
    %c0_5 = arith.constant 0 : index
    %3 = vector.load %arg4[%c0_4, %c0_5] : memref<1x128xf32, #tpu.memory_space<vmem>>, vector<1x128xf32>
    %cst = arith.constant dense<0.000000e+00> : vector<8xf32>
    %4 = vector.multi_reduction <add>, %1, %cst [1] : vector<8x128xf32> to vector<8xf32>
    %5 = vector.shape_cast %4 : vector<8xf32> to vector<8x1xf32>
    %cst_6 = arith.constant 1.280000e+02 : f32
    %6 = vector.broadcast %cst_6 : f32 to vector<8x1xf32>
    %7 = arith.divf %5, %6 : vector<8x1xf32>
    %8 = vector.broadcast %7 : vector<8x1xf32> to vector<8x128xf32>
    %9 = arith.subf %1, %8 : vector<8x128xf32>
    %10 = arith.mulf %9, %9 : vector<8x128xf32>
    %cst_7 = arith.constant dense<0.000000e+00> : vector<8xf32>
    %11 = vector.multi_reduction <add>, %10, %cst_7 [1] : vector<8x128xf32> to vector<8xf32>
    %12 = vector.shape_cast %11 : vector<8xf32> to vector<8x1xf32>
    %cst_8 = arith.constant 1.280000e+02 : f32
    %13 = vector.broadcast %cst_8 : f32 to vector<8x1xf32>
    %14 = arith.divf %12, %13 : vector<8x1xf32>
    %15 = vector.broadcast %7 : vector<8x1xf32> to vector<8x128xf32>
    %16 = arith.subf %1, %15 : vector<8x128xf32>
    %cst_9 = arith.constant 9.99999974E-6 : f32
    %17 = vector.broadcast %cst_9 : f32 to vector<8x1xf32>
    %18 = arith.addf %14, %17 : vector<8x1xf32>
    %19 = math.rsqrt %18 : vector<8x1xf32>
    %20 = vector.broadcast %19 : vector<8x1xf32> to vector<8x128xf32>
    %21 = arith.mulf %16, %20 : vector<8x128xf32>
    %22 = vector.broadcast %2 : vector<1x128xf32> to vector<8x128xf32>
    %23 = arith.mulf %21, %22 : vector<8x128xf32>
    %24 = vector.broadcast %3 : vector<1x128xf32> to vector<8x128xf32>
    %25 = arith.addf %23, %24 : vector<8x128xf32>
    %26 = arith.truncf %25 : vector<8x128xf32> to vector<8x128xbf16>
    %c0_10 = arith.constant 0 : index
    %c0_11 = arith.constant 0 : index
    %27 = vector.load %arg5[%c0_10, %c0_11] : memref<128x128xbf16, #tpu.memory_space<vmem>>, vector<128x128xbf16>
    %cst_12 = arith.constant dense<0.000000e+00> : vector<8x128xf32>
    %28 = tpu.matmul %26, %27, %cst_12 {dimension_numbers = #tpu.dot_dimension_numbers<[1], [0], [0], [1], [0, 0, 1, 1], [], []>} : vector<8x128xbf16>, vector<128x128xbf16>, vector<8x128xf32> -> vector<8x128xf32>
    %29 = arith.truncf %28 : vector<8x128xf32> to vector<8x128xbf16>
    %c0_13 = arith.constant 0 : index
    %c0_14 = arith.constant 0 : index
    %c0_15 = arith.constant 0 : index
    %30 = vector.load %arg8[%c0_13, %c0_14, %c0_15] : memref<1x8x128xbf16, #tpu.memory_space<vmem>>, vector<1x8x128xbf16>
    %31 = vector.shape_cast %30 : vector<1x8x128xbf16> to vector<8x128xbf16>
    %32 = vector.shape_cast %29 : vector<8x128xbf16> to vector<1x8x128xbf16>
    tpu.vector_store %arg8[%c0_13, %c0_14, %c0_15], %32 {strides = array<i32>} : memref<1x8x128xbf16, #tpu.memory_space<vmem>>, vector<1x8x128xbf16>,
    %c0_16 = arith.constant 0 : index
    %c0_17 = arith.constant 0 : index
    %33 = vector.load %arg6[%c0_16, %c0_17] : memref<128x128xbf16, #tpu.memory_space<vmem>>, vector<128x128xbf16>
    %cst_18 = arith.constant dense<0.000000e+00> : vector<8x128xf32>
    %34 = tpu.matmul %26, %33, %cst_18 {dimension_numbers = #tpu.dot_dimension_numbers<[1], [0], [0], [1], [0, 0, 1, 1], [], []>} : vector<8x128xbf16>, vector<128x128xbf16>, vector<8x128xf32> -> vector<8x128xf32>
    %35 = arith.truncf %34 : vector<8x128xf32> to vector<8x128xbf16>
    %c0_19 = arith.constant 0 : index
    %c0_20 = arith.constant 0 : index
    %c0_21 = arith.constant 0 : index
    %36 = vector.load %arg9[%c0_19, %c0_20, %c0_21] : memref<1x8x128xbf16, #tpu.memory_space<vmem>>, vector<1x8x128xbf16>
    %37 = vector.shape_cast %36 : vector<1x8x128xbf16> to vector<8x128xbf16>
    %38 = vector.shape_cast %35 : vector<8x128xbf16> to vector<1x8x128xbf16>
    tpu.vector_store %arg9[%c0_19, %c0_20, %c0_21], %38 {strides = array<i32>} : memref<1x8x128xbf16, #tpu.memory_space<vmem>>, vector<1x8x128xbf16>,
    %c0_22 = arith.constant 0 : index
    %c0_23 = arith.constant 0 : index
    %39 = vector.load %arg7[%c0_22, %c0_23] : memref<128x128xbf16, #tpu.memory_space<vmem>>, vector<128x128xbf16>
    %cst_24 = arith.constant dense<0.000000e+00> : vector<8x128xf32>
    %40 = tpu.matmul %26, %39, %cst_24 {dimension_numbers = #tpu.dot_dimension_numbers<[1], [0], [0], [1], [0, 0, 1, 1], [], []>} : vector<8x128xbf16>, vector<128x128xbf16>, vector<8x128xf32> -> vector<8x128xf32>
    %41 = arith.truncf %40 : vector<8x128xf32> to vector<8x128xbf16>
    %c0_25 = arith.constant 0 : index
    %c0_26 = arith.constant 0 : index
    %c0_27 = arith.constant 0 : index
    %42 = vector.load %arg10[%c0_25, %c0_26, %c0_27] : memref<1x8x128xbf16, #tpu.memory_space<vmem>>, vector<1x8x128xbf16>
    %43 = vector.shape_cast %42 : vector<1x8x128xbf16> to vector<8x128xbf16>
    %44 = vector.shape_cast %41 : vector<8x128xbf16> to vector<1x8x128xbf16>
    tpu.vector_store %arg10[%c0_25, %c0_26, %c0_27], %44 {strides = array<i32>} : memref<1x8x128xbf16, #tpu.memory_space<vmem>>, vector<1x8x128xbf16>,
    return
  }
  func.func @transform_0(%arg0: i32, %arg1: i32) -> (i32, i32, i32) {
    %c0_i32 = arith.constant 0 : i32
    %c0_i32_0 = arith.constant 0 : i32
    return %arg0, %arg1, %c0_i32 : i32, i32, i32
  }
  func.func @transform_1(%arg0: i32, %arg1: i32) -> (i32, i32) {
    %c0_i32 = arith.constant 0 : i32
    %c0_i32_0 = arith.constant 0 : i32
    %c0_i32_1 = arith.constant 0 : i32
    return %c0_i32, %c0_i32_0 : i32, i32
  }
  func.func @transform_2(%arg0: i32, %arg1: i32) -> (i32, i32) {
    %c0_i32 = arith.constant 0 : i32
    %c0_i32_0 = arith.constant 0 : i32
    %c0_i32_1 = arith.constant 0 : i32
    return %c0_i32, %c0_i32_0 : i32, i32
  }
  func.func @transform_3(%arg0: i32, %arg1: i32) -> (i32, i32) {
    %c0_i32 = arith.constant 0 : i32
    %c0_i32_0 = arith.constant 0 : i32
    %c0_i32_1 = arith.constant 0 : i32
    return %c0_i32, %c0_i32_0 : i32, i32
  }
  func.func @transform_4(%arg0: i32, %arg1: i32) -> (i32, i32) {
    %c0_i32 = arith.constant 0 : i32
    %c0_i32_0 = arith.constant 0 : i32
    %c0_i32_1 = arith.constant 0 : i32
    return %c0_i32, %c0_i32_0 : i32, i32
  }
  func.func @transform_5(%arg0: i32, %arg1: i32) -> (i32, i32) {
    %c0_i32 = arith.constant 0 : i32
    %c0_i32_0 = arith.constant 0 : i32
    %c0_i32_1 = arith.constant 0 : i32
    return %c0_i32, %c0_i32_0 : i32, i32
  }
  func.func @transform_6(%arg0: i32, %arg1: i32) -> (i32, i32, i32) {
    %c0_i32 = arith.constant 0 : i32
    %c0_i32_0 = arith.constant 0 : i32
    return %arg0, %arg1, %c0_i32 : i32, i32, i32
  }
  func.func @transform_7(%arg0: i32, %arg1: i32) -> (i32, i32, i32) {
    %c0_i32 = arith.constant 0 : i32
    %c0_i32_0 = arith.constant 0 : i32
    return %arg0, %arg1, %c0_i32 : i32, i32, i32
  }
  func.func @transform_8(%arg0: i32, %arg1: i32) -> (i32, i32, i32) {
    %c0_i32 = arith.constant 0 : i32
    %c0_i32_0 = arith.constant 0 : i32
    return %arg0, %arg1, %c0_i32 : i32, i32, i32
  }
}

</mosaic_0001>

<bundles_post_ra>
// kernel: tpu_custom_call.1
= control target key start
LH: loop header
LB: loop body
LE: loop exit
PB: predicated region body
PF: predicated region fallthrough
CT: control target
= control target key end

     0   :  { %s2122_s0 = inlined_call_operand.hbm [shape: f32[2,8,128], index: 0, kind: input, shape index: {}]   ;;  %s2123_s1 = inlined_call_operand.hbm [shape: f32[1,128], index: 1, kind: input, shape index: {}]   ;;  %s2124_s2 = inlined_call_operand.hbm [shape: f32[1,128], index: 2, kind: input, shape index: {}]   ;;  %s2125_s3 = inlined_call_operand.hbm [shape: bf16[128,128], index: 3, kind: input, shape index: {}]   ;;  %s2126_s4 = inlined_call_operand.hbm [shape: bf16[128,128], index: 4, kind: input, shape index: {}]   ;;  %s2127_s5 = inlined_call_operand.hbm [shape: bf16[128,128], index: 5, kind: input, shape index: {}]   ;;  %s2128_s6 = inlined_call_operand.hbm [shape: bf16[2,8,128], index: 6, kind: output, shape index: {0}]   ;;  %s2129_s7 = inlined_call_operand.hbm [shape: bf16[2,8,128], index: 7, kind: output, shape index: {1}]   ;;  %s2130_s8 = inlined_call_operand.hbm [shape: bf16[2,8,128], index: 8, kind: output, shape index: {2}]  }
   0x1   :  { %2139 = sst [smem:[#allocation23_spill]] %s2123_s1 }
   0x2   :  { %2140 = sst [smem:[#allocation24_spill]] %s2124_s2 }
   0x3   :  { %2141 = sst [smem:[#allocation25_spill]] %s2125_s3 }
   0x4   :  { %14 = vsyncpa [#allocation3], 0 }
   0x5   :  { %16 = vsyncpa [#allocation3 + $0x1], 0 }
   0x6   :  { %17 = vsyncpa [#allocation6], 0 }
   0x7   :  { %18 = vsyncpa [#allocation9], 0 }
   0x8   :  { %19 = vsyncpa [#allocation12], 0 }
   0x9   :  { %20 = vsyncpa [#allocation4], 0 }
   0xa   :  { %22 = vsyncpa [#allocation4 + $0x1], 0 }
   0xb   :  { %23 = vsyncpa [#allocation15], 0 }
   0xc   :  { %25 = vsyncpa [#allocation15 + $0x1], 0  ;;  %s1701_s27 = smov 0   ;;  %s1703_s28 = smov 0  }
   0xd   :  { %s1705_s29 = smov 0   ;;  %s1707_s30 = smov 0  }
   0xe   :  { %s1709_s9 = smov 0   ;;  %s1711_s10 = smov 0  }
   0xf LB: > { %s1732_s11 = sadd.s32 4294967295, %s1641_s10   ;;  %p1024_p0 = scmp.ge.s32.totalorder %s1641_s10, 1  ;;  %s1641_s10 = sphi %s1711_s10, %s31_s10   ;;  %s1637_s9 = sphi %s1709_s9, %s2171_s9   ;;  %s1633_s30 = sphi %s1707_s30, %s2170_s30   ;;  %s1629_s29 = sphi %s1705_s29, %s2169_s29   ;;  %s1625_s28 = sphi %s1703_s28, %s2168_s28   ;;  %s1621_s27 = sphi %s1701_s27, %s2167_s27  }
  0x10   : > { %p2131_p1 = scmp.eq.s32.totalorder %s1732_s11, 0  ;;  %p265_p2 = scmp.lt.s32.totalorder %s1641_s10, 3 }
  0x11   : > { %s1643_s13 = smov [#allocation5]   ;;  %s1644_s15 = smov [#allocation8]  }
  0x12   : > { %p1737_p3 = pnand %p1024_p0, %p265_p2  ;;  %s278_s14 = sshll.u32 %s1643_s13, 4  ;;  %s279_s14 = int_to_ptr.vmem [resolvable:$true] %s278_s14 }
  0x13   : > { %s299_s16 = sshll.u32 %s1644_s15, 4  ;;  %s1645_s18 = smov [#allocation7]   ;;  %s1750_s16 = int_to_ptr.vmem [resolvable:$true] %s299_s16 }
  0x14   : > { %s2142_s12 = scalar_select %p1737_p3, 1, 0 }
  0x15   : > { %p1192_p5 = pneg %p1737_p3  ;;  %s1752_s19 = sshll.u32 %s1645_s18, 4  ;;  %s290_s19 = int_to_ptr.vmem [resolvable:$true] %s1752_s19 }
  0x16   : > { %s2144_s1 = sld [smem:[#allocation23_spill]] }
  0x17   : > { %p1746_p6 = pnand %p1192_p5, %p2131_p1 }
  0x19   : > { %p1762_p8 = pneg %p1746_p6 }
  0x1c   : > { %s1317_s22 = scalar_lea.hbm %s2144_s1, 16 }
  0x1d   : > { %p1318_p7 = scmp.ne.s32.totalorder %s2144_s1, %s1317_s22  ;;  %p1324_p11 = scmp.lt.u32.totalorder %s1317_s22, %s2144_s1 }
  0x1f   : > { %p1320_p9 = pnand %p1762_p8, %p1318_p7 }
  0x21   : > { %p1321_p10 = pneg %p1320_p9 }
  0x23   : > { %p1326_p12 = pnand %p1324_p11, %p1321_p10 }
  0x25   : > { %1329 = shalt.err (!%p1326_p12)
}
  0x26   : > { %s1330_s15 = scalar_lea.vmem %s279_s14, 16  ;;  %s1337_s18 = scalar_lea.vmem %s279_s14, 32 }
  0x27   : > { %p1331_p13 = scmp.ne.s32.totalorder %s279_s14, %s1330_s15  ;;  %p1338_p5 = scmp.lt.s32.totalorder %s279_s14, %s279_s14 }
  0x28   : > { %p1339_p4 = scmp.lt.s32.totalorder %s1337_s18, %s1330_s15 }
  0x29   : > { %p1333_p0 = pnand %p1331_p13, %p1762_p8 }
  0x2a   : > { %p1340_p1 = por %p1339_p4, %p1338_p5 }
  0x2b   : > { %p1334_p2 = pneg %p1333_p0 }
  0x2d   : > { %p1341_p3 = pnand %p1340_p1, %p1334_p2 }
  0x2f   : > { %1344 = shalt.err (!%p1341_p3)
}
  0x30   : > { %1195 = dma.hbm_to_vmem [thread:$0]  (!%p1746_p6), %s2144_s1, 16, %s279_s14, [#allocation6]  }
  0x31   : > { %s2146_s3 = sld [smem:[#allocation25_spill]] }
  0x37   : > { %s1345_s24 = scalar_lea.hbm %s2146_s3, 1024 }
  0x38   : > { %p1346_p7 = scmp.ne.s32.totalorder %s2146_s3, %s1345_s24  ;;  %p1352_p1 = scmp.lt.u32.totalorder %s1345_s24, %s2146_s3 }
  0x3a   : > { %p1348_p9 = pnand %p1346_p7, %p1762_p8 }
  0x3c   : > { %p1349_p4 = pneg %p1348_p9 }
  0x3e   : > { %p1354_p3 = pnand %p1352_p1, %p1349_p4 }
  0x40   : > { %1357 = shalt.err (!%p1354_p3)
}
  0x41   : > { %s1358_s14 = scalar_lea.vmem %s1750_s16, 1024  ;;  %p1366_p13 = scmp.lt.s32.totalorder %s1750_s16, %s1750_s16 }
  0x42   : > { %p1359_p10 = scmp.ne.s32.totalorder %s1750_s16, %s1358_s14  ;;  %p1367_p0 = scmp.lt.s32.totalorder %s1358_s14, %s1358_s14 }
  0x44   : > { %p1361_p11 = pnand %p1359_p10, %p1762_p8  ;;  %p1368_p2 = por %p1367_p0, %p1366_p13 }
  0x46   : > { %p1362_p12 = pneg %p1361_p11 }
  0x48   : > { %p1369_p5 = pnand %p1368_p2, %p1362_p12 }
  0x4a   : > { %1372 = shalt.err (!%p1369_p5)
}
  0x4b   : > { %s2133_s20 = smov 64   ;;  %s2135_s21 = smov 4  }
  0x4c   : > { %1201 = dma.hbm_to_vmem [thread:$0]  (!%p1746_p6), %s2146_s3, 1024, %s1750_s16, [#allocation9], %s2133_s20, %s2133_s20, %s2135_s21  }
  0x4d   : > { %s2147_s2 = sld [smem:[#allocation24_spill]] }
  0x53   : > { %s1373_s13 = scalar_lea.hbm %s2147_s2, 16 }
  0x54   : > { %p1374_p7 = scmp.ne.s32.totalorder %s2147_s2, %s1373_s13  ;;  %p1380_p1 = scmp.lt.u32.totalorder %s1373_s13, %s2147_s2 }
  0x56   : > { %p1376_p9 = pnand %p1374_p7, %p1762_p8 }
  0x58   : > { %p1377_p4 = pneg %p1376_p9 }
  0x5a   : > { %p1382_p3 = pnand %p1380_p1, %p1377_p4 }
  0x5c   : > { %1385 = shalt.err (!%p1382_p3)
}
  0x5d   : > { %s1386_s22 = scalar_lea.vmem %s290_s19, 16  ;;  %s1393_s16 = scalar_lea.vmem %s290_s19, 32 }
  0x5e   : > { %p1387_p10 = scmp.ne.s32.totalorder %s290_s19, %s1386_s22  ;;  %p1394_p13 = scmp.lt.s32.totalorder %s290_s19, %s290_s19 }
  0x5f   : > { %p1395_p0 = scmp.lt.s32.totalorder %s1393_s16, %s1386_s22 }
  0x60   : > { %p1389_p11 = pnand %p1387_p10, %p1762_p8 }
  0x61   : > { %p1396_p2 = por %p1395_p0, %p1394_p13 }
  0x62   : > { %p1390_p12 = pneg %p1389_p11 }
  0x64   : > { %p1397_p5 = pnand %p1396_p2, %p1390_p12 }
  0x66   : > { %1400 = shalt.err (!%p1397_p5)
}
  0x67   : > { %1198 = dma.hbm_to_vmem [thread:$0]  (!%p1746_p6), %s2147_s2, 16, %s290_s19, [#allocation6]  }
  0x68   : > { %s1648_s1 = smov [#allocation10]   ;;  %s1649_s13 = smov [#allocation11]  }
  0x69   : > { %s312_s26 = sshll.u32 %s1648_s1, 4  ;;  %s325_s15 = sshll.u32 %s1649_s13, 4  ;;  %s313_s26 = int_to_ptr.vmem [resolvable:$true] %s312_s26  ;;  %s326_s15 = int_to_ptr.vmem [resolvable:$true] %s325_s15 }
  0x6a   : > { %s1401_s20 = scalar_lea.hbm %s2126_s4, 1024 }
  0x6b   : > { %p1402_p7 = scmp.ne.s32.totalorder %s2126_s4, %s1401_s20  ;;  %p1408_p1 = scmp.lt.u32.totalorder %s1401_s20, %s2126_s4 }
  0x6d   : > { %p1404_p9 = pnand %p1402_p7, %p1762_p8 }
  0x6f   : > { %p1405_p4 = pneg %p1404_p9 }
  0x71   : > { %p1410_p3 = pnand %p1408_p1, %p1405_p4 }
  0x73   : > { %1413 = shalt.err (!%p1410_p3)
}
  0x74   : > { %s1414_s19 = scalar_lea.vmem %s313_s26, 1024  ;;  %p1422_p13 = scmp.lt.s32.totalorder %s313_s26, %s313_s26 }
  0x75   : > { %p1415_p10 = scmp.ne.s32.totalorder %s313_s26, %s1414_s19  ;;  %p1423_p0 = scmp.lt.s32.totalorder %s1414_s19, %s1414_s19 }
  0x77   : > { %p1417_p11 = pnand %p1415_p10, %p1762_p8  ;;  %p1424_p2 = por %p1423_p0, %p1422_p13 }
  0x79   : > { %p1418_p12 = pneg %p1417_p11 }
  0x7b   : > { %p1425_p5 = pnand %p1424_p2, %p1418_p12 }
  0x7d   : > { %1428 = shalt.err (!%p1425_p5)
}
  0x7e   : > { %s2148_s24 = smov 4   ;;  %s2149_s1 = smov 64  }
  0x7f   : > { %1204 = dma.hbm_to_vmem [thread:$0]  (!%p1746_p6), %s2126_s4, 1024, %s313_s26, [#allocation9], %s2149_s1, %s2149_s1, %s2148_s24  }
  0x80   : > { %s1429_s14 = scalar_lea.hbm %s2127_s5, 1024 }
  0x81   : > { %p1430_p7 = scmp.ne.s32.totalorder %s2127_s5, %s1429_s14  ;;  %p1436_p1 = scmp.lt.u32.totalorder %s1429_s14, %s2127_s5 }
  0x83   : > { %p1432_p9 = pnand %p1430_p7, %p1762_p8 }
  0x85   : > { %p1433_p4 = pneg %p1432_p9 }
  0x87   : > { %p1438_p3 = pnand %p1436_p1, %p1433_p4 }
  0x89   : > { %1441 = shalt.err (!%p1438_p3)
}
  0x8a   : > { %s1442_s21 = scalar_lea.vmem %s326_s15, 1024  ;;  %p1450_p13 = scmp.lt.s32.totalorder %s326_s15, %s326_s15 }
  0x8b   : > { %p1443_p10 = scmp.ne.s32.totalorder %s326_s15, %s1442_s21  ;;  %p1451_p0 = scmp.lt.s32.totalorder %s1442_s21, %s1442_s21 }
  0x8d   : > { %p1445_p11 = pnand %p1443_p10, %p1762_p8  ;;  %p1452_p2 = por %p1451_p0, %p1450_p13 }
  0x8f   : > { %p1446_p12 = pneg %p1445_p11 }
  0x91   : > { %p1453_p5 = pnand %p1452_p2, %p1446_p12 }
  0x93   : > { %1456 = shalt.err (!%p1453_p5)
}
  0x94   : > { %1207 = dma.hbm_to_vmem [thread:$0]  (!%p1746_p6), %s2127_s5, 1024, %s326_s15, [#allocation12], %s2149_s1, %s2149_s1, %s2148_s24  }
  0x95   : > { %s2137_s17 = sadd.s32 4294967294, %s1641_s10   ;;  %s43_s25 = sadd.s32 1, %s1637_s9 }
  0x96   : > { %s52_s13 = sadd.s32 1, %s1629_s29  ;;  %p45_p8 = scmp.ge.s32.totalorder %s43_s25, 2 }
  0x97   : > { %p59_p7 = scmp.ne.s32.totalorder %s1629_s29, %s1625_s28  ;;  %p60_p9 = scmp.eq.s32.totalorder %s1641_s10, 0 }
  0x98   : > { %p65_p4 = scmp.ne.s32.totalorder %s1625_s28, %s1621_s27  ;;  %s2173_s25 = smov (%p45_p8, %s43_s25), 0 }
  0x99   : > { %p1875_p1 = por %p60_p9, %p59_p7  ;;  %p2151_p3 = scmp.eq.s32.totalorder %s1732_s11, 0 }
  0x9a   : > { %s47_s24 = ssub.s32 %s1637_s9, %s2173_s25  ;;  %p196_p10 = scmp.eq.s32.totalorder %s1732_s11, 1 }
  0x9b   : > { %p1881_p6 = por %p2151_p3, %p65_p4  ;;  %p50_p11 = scmp.eq.s32.totalorder %s47_s24, 0 }
  0x9c   : > { %p202_p12 = scmp.eq.s32.totalorder %s2137_s17, 1  ;;  %p1890_p13 = por %p196_p10, %p59_p7 }
  0x9d   : > { %p1227_p0 = scmp.lt.s32.totalorder %s1641_s10, 2  ;;  %s339_s16 = sand.u32 1, %s1629_s29  }
  0x9e   : > { %s2153_s1 = scalar_select %p1890_p13, 1, 0 }
  0x9f   : > { %s1896_s14 = scalar_select %p50_p11, %s1629_s29, %s52_s13  }
  0xa0   : > { %p1898_p2 = por %p202_p12, %p65_p4  ;;  %s1031_s23 = sshll.u32 %s339_s16, 3 }
  0xa1   : > { %s1032_s19 = sshll.u32 %s1637_s9, 7  ;;  %s343_s24 = scalar_lea.vmem [#allocation2], %s1031_s23 }
  0xa2   : > { %s2154_s22 = scalar_select %p1898_p2, 1, 0 }
  0xa3   : > { %s1907_s20 = scalar_lea.hbm %s2122_s0, %s1032_s19  ;;  %s351_s17 = sshll.u32 %s343_s24, 4  ;;  %s1909_s17 = int_to_ptr.vmem [resolvable:$true] %s351_s17 }
  0xa4   : > { %p1913_p5 = pnand %p1227_p0, %p1875_p1  ;;  %s340_s2 = scalar_lea.sflag [#allocation3], %s339_s16 }
  0xa5   : > { %s1457_s3 = scalar_lea.hbm %s1907_s20, 128  ;;  %s1462_s21 = scalar_lea.hbm %s2122_s0, 256 }
  0xa6   : > { %p1458_p8 = scmp.ne.s32.totalorder %s1907_s20, %s1457_s3  ;;  %p1459_p7 = pneg %p1913_p5 }
  0xa7   : > { %p1463_p1 = scmp.lt.u32.totalorder %s1907_s20, %s2122_s0  ;;  %p1464_p3 = scmp.lt.u32.totalorder %s1462_s21, %s1457_s3 }
  0xa8   : > { %p1460_p9 = pnand %p1459_p7, %p1458_p8  ;;  %p1466_p11 = scmp.lt.u32.totalorder %s1457_s3, %s1907_s20 }
  0xa9   : > { %p1465_p10 = por %p1464_p3, %p1463_p1 }
  0xaa   : > { %p1461_p4 = pneg %p1460_p9 }
  0xab   : > { %p1467_p12 = por %p1466_p11, %p1465_p10 }
  0xad   : > { %p1468_p0 = pnand %p1467_p12, %p1461_p4 }
  0xaf   : > { %1471 = shalt.err (!%p1468_p0)
}
  0xb0   : > { %s1472_s16 = scalar_lea.vmem %s1909_s17, 128  ;;  %s1650_s24 = smov [#allocation2]  }
  0xb1   : > { %p1473_p8 = scmp.ne.s32.totalorder %s1909_s17, %s1472_s16  ;;  %s1477_s23 = sshll.u32 %s1650_s24, 4  ;;  %s1478_s23 = int_to_ptr.vmem [resolvable:$false] %s1477_s23 }
  0xb2   : > { %s1479_s19 = scalar_lea.vmem %s1478_s23, 256  ;;  %p1480_p13 = scmp.lt.s32.totalorder %s1909_s17, %s1478_s23 }
  0xb3   : > { %p1475_p9 = pnand %p1473_p8, %p1459_p7  ;;  %p1481_p1 = scmp.lt.s32.totalorder %s1479_s19, %s1472_s16 }
  0xb5   : > { %p1476_p2 = pneg %p1475_p9  ;;  %p1482_p3 = por %p1481_p1, %p1480_p13 }
  0xb7   : > { %p1483_p10 = pnand %p1482_p3, %p1476_p2 }
  0xb9   : > { %1486 = shalt.err (!%p1483_p10)
}
  0xba   : > { %1211 = dma.hbm_to_vmem [thread:$0]  (!%p1913_p5), %s1907_s20, 128, %s1909_s17, %s340_s2  }
  0xbb   : > { %p2156_p4 = scmp.ne.s32.totalorder %s2142_s12, 0 }
  0xbc   : > { %s1945_s3 = sand.u32 (!%p2156_p4), 1, %s1625_s28  }
  0xbd   : > { %360 = sbr.rel (%p2156_p4) target bundleno = 796 (0x31c), region = 44  ;;  %s1034_s21 = sshll.u32 (!%p2156_p4), %s1945_s3, 3 }
  0xbe   : > { %s363_s18 = scalar_lea.sflag (!%p2156_p4), [#allocation3], %s1945_s3  ;;  %s366_s26 = scalar_lea.vmem (!%p2156_p4), [#allocation2], %s1034_s21 }
  0xc4   : > { %1596 = dma.done.wait (%p1881_p6), %s363_s18, 128  }
  0xc5   : > { %1598 = vsyncadd (%p1881_p6), %s363_s18, 4294967168  ;;  %p2157_p13 = scmp.eq.s32.totalorder %s1732_s11, 0 }
  0xc7   : > { %1600 = dma.done.wait (%p2157_p13), [#allocation6], 32   ;;  %p2158_p2 = pmov %p2157_p13 }
  0xc9   : > { %1602 = vsyncadd (%p2158_p2), [#allocation6], 4294967264  ;;  %p2159_p5 = pmov %p2158_p2 }
  0xca   : > { %p2160_p7 = pmov %p2158_p2 }
  0xcb   : > { %1604 = dma.done.wait (%p2159_p5), [#allocation9], 2048  }
  0xcc   : > { %1606 = vsyncadd (%p2160_p7), [#allocation9], 4294965248  ;;  %p2161_p11 = pmov %p2158_p2 }
  0xcd   : > { %p2162_p12 = pmov %p2158_p2 }
  0xce   : > { %1608 = dma.done.wait (%p2161_p11), [#allocation12], 1024  }
  0xcf   : > { %1610 = vsyncadd (%p2162_p12), [#allocation12], 4294966272  ;;  %v430_v0 = vld [vmem:[%s366_s26] sm:$0xff]  ;;  %v1291_v1 = vld [vmem:[#allocation8] sm:$0xff]   ;;  %v1651_v3 = vmov 0.0   ;;  %vm1652_vm0 = vmmov 0  }
  0xd0   : > { %433 = vadd.xlane.f32.xlu0 %v430_v0  ;;  %v1292_v2 = vld [vmem:[#allocation10] sm:$0xff]   ;;  %1104 = vmatprep.subr.bf16.mxu0 %v1651_v3  ;;  %v1293_v4 = vld [vmem:[#allocation8 + $0x8] sm:$0xff]   ;;  %v1295_v6 = vld [vmem:[#allocation8 + $0x10] sm:$0xff]   ;;  %s1996_s2 = sshll.u32 %s1945_s3, 2  ;;  %s783_s12 = sand.u32 1, %s1732_s11  }
  0xd1   : > { %1124 = vmatprep.subr.bf16.mxu1 %v1651_v3  ;;  %1105 = vmatpush3.bf16.msra.mxu0 %v1291_v1  ;;  %v1294_v5 = vld [vmem:[#allocation10 + $0x8] sm:$0xff]   ;;  %v1296_v11 = vld [vmem:[#allocation10 + $0x10] sm:$0xff]   ;;  %v1297_v12 = vld [vmem:[#allocation8 + $0x18] sm:$0xff]   ;;  %s2000_s17 = sshll.u32 %s1633_s30, 6  ;;  %s421_s15 = scalar_lea.vmem [#allocation14], %s1996_s2 }
  0xd2   : > { %1125 = vmatpush3.bf16.msra.mxu1 %v1292_v2  ;;  %1106 = vmatprep.subr.bf16.mxu0 %v1651_v3  ;;  %v1298_v13 = vld [vmem:[#allocation10 + $0x18] sm:$0xff]   ;;  %v1299_v14 = vld [vmem:[#allocation8 + $0x20] sm:$0xff]   ;;  %v1301_v16 = vld [vmem:[#allocation8 + $0x28] sm:$0xff]   ;;  %s817_s20 = sshll.u32 %s421_s15, 4  ;;  %s414_s13 = scalar_lea.vmem [#allocation13], %s1996_s2  ;;  %s2010_s20 = int_to_ptr.vmem [resolvable:$true] %s817_s20 }
  0xd3   : > { %1126 = vmatprep.subr.bf16.mxu1 %v1651_v3  ;;  %v1300_v15 = vld [vmem:[#allocation10 + $0x20] sm:$0xff]   ;;  %1120 = vmatprep.mubr.msk.bf16.mxu0 %vm1652_vm0, %v1651_v3  ;;  %v1302_v17 = vld [vmem:[#allocation10 + $0x28] sm:$0xff]   ;;  %v1303_v18 = vld [vmem:[#allocation8 + $0x30] sm:$0xff]   ;;  %s803_s16 = sshll.u32 %s414_s13, 4  ;;  %s2008_s19 = scalar_lea.hbm %s2129_s7, %s2000_s17  ;;  %s2018_s16 = int_to_ptr.vmem [resolvable:$true] %s803_s16 }
  0xd4   : > { %1140 = vmatprep.mubr.msk.bf16.mxu1 %vm1652_vm0, %v1651_v3  ;;  %v1304_v19 = vld [vmem:[#allocation10 + $0x30] sm:$0xff]   ;;  %v1305_v20 = vld [vmem:[#allocation8 + $0x38] sm:$0xff]   ;;  %v1307_v31 = vld [vmem:[#allocation11] sm:$0xff]   ;;  %s2016_s21 = scalar_lea.hbm %s2128_s6, %s2000_s17  ;;  %s2020_s18 = scalar_lea.sflag [#allocation15], %s783_s12 }
  0xd5   : > { %1107 = vmatpush3.bf16.msra.mxu0 %v1293_v4  ;;  %v1306_v21 = vld [vmem:[#allocation10 + $0x38] sm:$0xff]   ;;  %v1308_v33 = vld [vmem:[#allocation11 + $0x8] sm:$0xff]   ;;  %v1309_v34 = vld [vmem:[#allocation11 + $0x10] sm:$0xff]   ;;  %s1487_s26 = scalar_lea.vmem %s2010_s20, 64  ;;  %p2163_p0 = scmp.ne.s32.totalorder %s2153_s1, 0 }
  0xd6   : > { %1127 = vmatpush3.bf16.msra.mxu1 %v1294_v5  ;;  %1108 = vmatprep.subr.bf16.mxu0 %v1651_v3  ;;  %v1043_v26 = vld [vmem:[#allocation5] ss:$0 sm:$0xff]  ;;  %v1044_v28 = vld [vmem:[#allocation7] ss:$0 sm:$0xff]  ;;  %v1311_v36 = vld [vmem:[#allocation11 + $0x20] sm:$0xff]   ;;  %p1488_p6 = scmp.ne.s32.totalorder %s2010_s20, %s1487_s26  ;;  %s1653_s24 = smov [#allocation14]  }
  0xd7   : > { %1128 = vmatprep.subr.bf16.mxu1 %v1651_v3  ;;  %v1310_v35 = vld [vmem:[#allocation11 + $0x18] sm:$0xff]   ;;  %v1312_v37 = vld [vmem:[#allocation11 + $0x28] sm:$0xff]   ;;  %v1313_v38 = vld [vmem:[#allocation11 + $0x30] sm:$0xff]   ;;  %s1491_s23 = sshll.u32 %s1653_s24, 4  ;;  %s1492_s23 = int_to_ptr.vmem [resolvable:$false] %s1491_s23 }
  0xd8   : > { %v1314_v39 = vld [vmem:[#allocation11 + $0x38] sm:$0xff]   ;;  %p1489_p8 = pnand %p1488_p6, %p2163_p0  ;;  %s1493_s30 = scalar_lea.vmem %s1492_s23, 128 }
  0xd9   : > { %1109 = vmatpush3.bf16.msra.mxu0 %v1295_v6  ;;  %p1494_p1 = scmp.lt.s32.totalorder %s2010_s20, %s1492_s23  ;;  %p1495_p3 = scmp.lt.s32.totalorder %s1493_s30, %s1487_s26 }
  0xda   : > { %1110 = vmatprep.subr.bf16.mxu0 %v1651_v3  ;;  %1129 = vmatpush3.bf16.msra.mxu1 %v1296_v11  ;;  %p1490_p9 = pneg %p1489_p8 }
  0xdb   : > { %1130 = vmatprep.subr.bf16.mxu1 %v1651_v3  ;;  %p1496_p10 = por %p1495_p3, %p1494_p1 }
  0xdd   : > { %1111 = vmatpush3.bf16.msra.mxu0 %v1297_v12  ;;  %p1497_p4 = pnand %p1496_p10, %p1490_p9 }
  0xde   : > { %1131 = vmatpush3.bf16.msra.mxu1 %v1298_v13  ;;  %1112 = vmatprep.subr.bf16.mxu0 %v1651_v3 }
  0xdf   : > { %1132 = vmatprep.subr.bf16.mxu1 %v1651_v3 }
  0xe1   : > { %1113 = vmatpush3.bf16.msra.mxu0 %v1299_v14 }
  0xe2   : > { %1133 = vmatpush3.bf16.msra.mxu1 %v1300_v15  ;;  %1114 = vmatprep.subr.bf16.mxu0 %v1651_v3 }
  0xe3   : > { %1134 = vmatprep.subr.bf16.mxu1 %v1651_v3 }
  0xe5   : > { %1115 = vmatpush3.bf16.msra.mxu0 %v1301_v16 }
  0xe6   : > { %1135 = vmatpush3.bf16.msra.mxu1 %v1302_v17  ;;  %1116 = vmatprep.subr.bf16.mxu0 %v1651_v3 }
  0xe7   : > { %1136 = vmatprep.subr.bf16.mxu1 %v1651_v3 }
  0xe9   : > { %1117 = vmatpush3.bf16.msra.mxu0 %v1303_v18 }
  0xea   : > { %1137 = vmatpush3.bf16.msra.mxu1 %v1304_v19  ;;  %1118 = vmatprep.subr.bf16.mxu0 %v1651_v3 }
  0xeb   : > { %1138 = vmatprep.subr.bf16.mxu1 %v1651_v3 }
  0xed   : > { %1119 = vmatpush3.bf16.msra.mxu0 %v1305_v20 }
  0xee   : > { %1139 = vmatpush3.bf16.msra.mxu1 %v1306_v21  ;;  %1144 = vmatprep.subr.bf16.mxu0 %v1651_v3 }
 0x15d   : > { %v434_v7 = vpop.xlane.xlu0 %433 }
 0x15e   : > { %v436_v8 = vmul.f32 0.0078125, %v434_v7 }
 0x160   : > { %v437_v9 = vsub.f32 %v430_v0, %v436_v8 }
 0x162   : > { %v438_v10 = vmul.f32 %v437_v9, %v437_v9 }
 0x164   : > { %439 = vadd.xlane.f32.xlu0 %v438_v10 }
 0x1f1   : > { %v440_v22 = vpop.xlane.xlu0 %439 }
 0x1f2   : > { %v441_v23 = vmul.f32 0.0078125, %v440_v22 }
 0x1f4   : > { %v442_v24 = vadd.f32 1e-05, %v441_v23 }
 0x1f6   : > { %1315 = vrsqrt.f32 %v442_v24 }
 0x200   : > { %v1316_v25 = vpop.eup %1315 }
 0x201   : > { %v444_v27 = vmul.f32 %v1316_v25, %v437_v9 }
 0x203   : > { %v451_v29 = vmul.f32 %v1043_v26, %v444_v27 }
 0x205   : > { %v458_v30 = vadd.f32 %v1044_v28, %v451_v29 }
 0x207   : > { %v459_v32 = vpack.c.bf16 %v458_v30, %v458_v30 }
 0x209   : > { %1121 = vmatmul.mubr.bf16.vlgmr.msra.gmra.mrb[0].mxu0 %v459_v32  ;;  %1141 = vmatmul.mubr.bf16.vlgmr.msra.gmra.mrb[0].mxu1 %v459_v32 }
 0x20a   : > { %1145 = vmatpush3.bf16.msra.mxu0 %v1307_v31  ;;  %1160 = vmatprep.mubr.msk.bf16.mxu0 %vm1652_vm0, %v1651_v3 }
 0x20b   : > { %1146 = vmatprep.subr.bf16.mxu0 %v1651_v3 }
 0x20e   : > { %1147 = vmatpush3.bf16.msra.mxu0 %v1308_v33 }
 0x20f   : > { %1148 = vmatprep.subr.bf16.mxu0 %v1651_v3 }
 0x212   : > { %1149 = vmatpush3.bf16.msra.mxu0 %v1309_v34 }
 0x213   : > { %1150 = vmatprep.subr.bf16.mxu0 %v1651_v3 }
 0x216   : > { %1151 = vmatpush3.bf16.msra.mxu0 %v1310_v35 }
 0x217   : > { %1152 = vmatprep.subr.bf16.mxu0 %v1651_v3 }
 0x21a   : > { %1153 = vmatpush3.bf16.msra.mxu0 %v1311_v36 }
 0x21b   : > { %1154 = vmatprep.subr.bf16.mxu0 %v1651_v3 }
 0x21e   : > { %1155 = vmatpush3.bf16.msra.mxu0 %v1312_v37 }
 0x21f   : > { %1156 = vmatprep.subr.bf16.mxu0 %v1651_v3 }
 0x222   : > { %1157 = vmatpush3.bf16.msra.mxu0 %v1313_v38 }
 0x223   : > { %1158 = vmatprep.subr.bf16.mxu0 %v1651_v3 }
 0x226   : > { %1159 = vmatpush3.bf16.msra.mxu0 %v1314_v39 }
 0x229   : > { %1161 = vmatmul.mubr.bf16.vlgmr.msra.gmra.mrb[4].mxu0 %v459_v32 }
 0x2dc   : > { %v558_v40 = vpop.f32.mrb[0].mxu0  ;;  %v664_v41 = vpop.f32.mrb[0].mxu1 }
 0x2dd   : > { %v564_v42 = vpack.c.bf16 %v558_v40, %v558_v40  ;;  %v670_v43 = vpack.c.bf16 %v664_v41, %v664_v41  ;;  %v1122_v44 = vpop.f32.mrb[1].mxu0  ;;  %v1142_v45 = vpop.f32.mrb[1].mxu1 }
 0x2de   : > { %v561_v46 = vpop.f32.mrb[2].mxu0  ;;  %v667_v47 = vpop.f32.mrb[2].mxu1 }
 0x2df   : > { %565 = vst [vmem:[%s414_s13] sm:$0xf] %v564_v42  ;;  %671 = vst [vmem:[%s421_s15] sm:$0xf] %v670_v43  ;;  %v1123_v48 = vpop.f32.mrb[3].mxu0  ;;  %v1143_v49 = vpop.f32.mrb[3].mxu1 }
 0x2e0   : > { %1500 = shalt.err (!%p1497_p4)
}
 0x2e1   : > { %s1501_s12 = scalar_lea.hbm %s2008_s19, 64  ;;  %s1505_s11 = scalar_lea.hbm %s2129_s7, 128 }
 0x2e2   : > { %p1502_p13 = scmp.ne.s32.totalorder %s2008_s19, %s1501_s12  ;;  %p1506_p7 = scmp.lt.u32.totalorder %s2008_s19, %s2129_s7 }
 0x2e3   : > { %p1507_p11 = scmp.lt.u32.totalorder %s1505_s11, %s1501_s12  ;;  %p1509_p6 = scmp.lt.u32.totalorder %s1501_s12, %s2008_s19 }
 0x2e4   : > { %p1503_p2 = pnand %p1502_p13, %p2163_p0 }
 0x2e5   : > { %p1508_p12 = por %p1507_p11, %p1506_p7 }
 0x2e6   : > { %p1504_p5 = pneg %p1503_p2 }
 0x2e7   : > { %p1510_p8 = por %p1509_p6, %p1508_p12 }
 0x2e9   : > { %p1511_p9 = pnand %p1510_p8, %p1504_p5 }
 0x2eb   : > { %1514 = shalt.err (!%p1511_p9)
}
 0x2ec   : > { %1187 = dma.vmem_to_hbm [thread:$0]  (%p2163_p0), %s2010_s20, 64, %s2008_s19, %s2020_s18  }
 0x2ed   : > { %s779_s26 = scalar_lea.sflag [#allocation4], %s1945_s3  ;;  %s1515_s30 = scalar_lea.vmem %s2018_s16, 64 }
 0x2ee   : > { %p1516_p1 = scmp.ne.s32.totalorder %s2018_s16, %s1515_s30  ;;  %s1654_s12 = smov [#allocation13]  }
 0x2ef   : > { %s1519_s15 = sshll.u32 %s1654_s12, 4  ;;  %s1520_s15 = int_to_ptr.vmem [resolvable:$false] %s1519_s15 }
 0x2f0   : > { %p1517_p3 = pnand %p1516_p1, %p2163_p0  ;;  %s1521_s13 = scalar_lea.vmem %s1520_s15, 128 }
 0x2f1   : > { %p1522_p4 = scmp.lt.s32.totalorder %s2018_s16, %s1520_s15  ;;  %p1523_p13 = scmp.lt.s32.totalorder %s1521_s13, %s1515_s30 }
 0x2f2   : > { %p1518_p10 = pneg %p1517_p3 }
 0x2f3   : > { %p1524_p2 = por %p1523_p13, %p1522_p4 }
 0x2f5   : > { %p1525_p5 = pnand %p1524_p2, %p1518_p10 }
 0x2f7   : > { %1528 = shalt.err (!%p1525_p5)
}
 0x2f8   : > { %s1529_s3 = scalar_lea.hbm %s2016_s21, 64  ;;  %s1533_s11 = scalar_lea.hbm %s2128_s6, 128 }
 0x2f9   : > { %p1530_p7 = scmp.ne.s32.totalorder %s2016_s21, %s1529_s3  ;;  %p1534_p6 = scmp.lt.u32.totalorder %s2016_s21, %s2128_s6 }
 0x2fa   : > { %p1535_p8 = scmp.lt.u32.totalorder %s1533_s11, %s1529_s3  ;;  %p1537_p1 = scmp.lt.u32.totalorder %s1529_s3, %s2016_s21 }
 0x2fb   : > { %p1531_p11 = pnand %p1530_p7, %p2163_p0 }
 0x2fc   : > { %p1536_p9 = por %p1535_p8, %p1534_p6 }
 0x2fd   : > { %p1532_p12 = pneg %p1531_p11 }
 0x2fe   : > { %p1538_p3 = por %p1537_p1, %p1536_p9 }
 0x300   : > { %p1539_p10 = pnand %p1538_p3, %p1532_p12 }
 0x302   : > { %1542 = shalt.err (!%p1539_p10)
}
 0x303   : > { %1186 = dma.vmem_to_hbm [thread:$0]  (%p2163_p0), %s2018_s16, 64, %s2016_s21, %s779_s26   ;;  %v770_v50 = vpop.f32.mrb[4].mxu0 }
 0x304   : > { %s428_s30 = scalar_lea.vmem [#allocation16], %s1996_s2  ;;  %v776_v51 = vpack.c.bf16 %v770_v50, %v770_v50  ;;  %v1162_v52 = vpop.f32.mrb[5].mxu0  ;;  %s2071_s3 = scalar_lea.hbm %s2130_s8, %s2000_s17 }
 0x305   : > { %s831_s12 = sshll.u32 %s428_s30, 4  ;;  %v773_v53 = vpop.f32.mrb[6].mxu0  ;;  %s1655_s2 = smov [#allocation16]   ;;  %s2073_s12 = int_to_ptr.vmem [resolvable:$true] %s831_s12 }
 0x306   : > { %777 = vst [vmem:[%s428_s30] sm:$0xf] %v776_v51  ;;  %v1163_v54 = vpop.f32.mrb[7].mxu0  ;;  %s1543_s20 = scalar_lea.vmem %s2073_s12, 64  ;;  %s1547_s16 = sshll.u32 %s1655_s2, 4  ;;  %s1548_s16 = int_to_ptr.vmem [resolvable:$false] %s1547_s16 }
 0x307   : > { %p1544_p4 = scmp.ne.s32.totalorder %s2073_s12, %s1543_s20  ;;  %s1549_s21 = scalar_lea.vmem %s1548_s16, 128 }
 0x308   : > { %p1550_p5 = scmp.lt.s32.totalorder %s2073_s12, %s1548_s16  ;;  %p1551_p7 = scmp.lt.s32.totalorder %s1549_s21, %s1543_s20 }
 0x309   : > { %p1545_p13 = pnand %p1544_p4, %p2163_p0 }
 0x30a   : > { %p1552_p11 = por %p1551_p7, %p1550_p5 }
 0x30b   : > { %p1546_p2 = pneg %p1545_p13 }
 0x30d   : > { %p1553_p12 = pnand %p1552_p11, %p1546_p2 }
 0x30f   : > { %1556 = shalt.err (!%p1553_p12)
}
 0x310   : > { %s1557_s17 = scalar_lea.hbm %s2071_s3, 64  ;;  %s1561_s11 = scalar_lea.hbm %s2130_s8, 128 }
 0x311   : > { %p1558_p6 = scmp.ne.s32.totalorder %s2071_s3, %s1557_s17  ;;  %p1562_p1 = scmp.lt.u32.totalorder %s2071_s3, %s2130_s8 }
 0x312   : > { %p1563_p3 = scmp.lt.u32.totalorder %s1561_s11, %s1557_s17  ;;  %p1565_p4 = scmp.lt.u32.totalorder %s1557_s17, %s2071_s3 }
 0x313   : > { %p1559_p8 = pnand %p1558_p6, %p2163_p0 }
 0x314   : > { %p1564_p10 = por %p1563_p3, %p1562_p1 }
 0x315   : > { %p1560_p9 = pneg %p1559_p8 }
 0x316   : > { %p1566_p13 = por %p1565_p4, %p1564_p10 }
 0x318   : > { %p1567_p2 = pnand %p1566_p13, %p1560_p9 }
 0x31a   : > { %1570 = shalt.err (!%p1567_p2)
}
 0x31b   : > { %1188 = dma.vmem_to_hbm [thread:$0]  (%p2163_p0), %s2073_s12, 64, %s2071_s3, %s2020_s18  }
 0x31c PF: > { %s843_s30 = sand.u32 1, %s1621_s27   ;;  %p2164_p5 = scmp.ne.s32.totalorder %s2154_s22, 0 }
 0x31d   : > { %p2165_p7 = scmp.ge.s32.totalorder %s1641_s10, 2  ;;  %s844_s15 = scalar_lea.sflag [#allocation4], %s843_s30 }
 0x31f   : > { %p1213_p11 = pnand %p2165_p7, %p2164_p5 }
 0x321   : > { %1612 = dma.done.wait (!%p1213_p11), %s844_s15, 64  }
 0x322   : > { %1614 = vsyncadd (!%p1213_p11), %s844_s15, 4294967232  ;;  %s2166_s13 = sadd.s32 4294967294, %s1641_s10  }
 0x323   : > { %s852_s20 = sand.u32 1, %s2166_s13  }
 0x324   : > { %s853_s2 = scalar_lea.sflag [#allocation15], %s852_s20 }
 0x325   : > { %1616 = dma.done.wait (!%p1213_p11), %s853_s2, 128  }
 0x326   : > { %1618 = vsyncadd (!%p1213_p11), %s853_s2, 4294967168  ;;  %s31_s10 = sadd.s32 1, %s1641_s10   ;;  %s2167_s27 = smov %s1625_s28 }
 0x327   : > { %p28_p0 = scmp.ge.s32.totalorder %s31_s10, 4   ;;  %s2168_s28 = smov %s1629_s29 }
 0x328   : > { %s2169_s29 = smov %s1896_s14  ;;  %s2170_s30 = smov %s1637_s9 }
 0x329   : > { %s2171_s9 = smov %s2173_s25  ;;  %30 = sbr.rel (!%p28_p0) target bundleno = 15 (0xf), region = 141 }
 0x330   :  { %867 = vsyncpa [#allocation3], 1 }
 0x331   :  { %869 = vsyncpa [#allocation3 + $0x1], 1 }
 0x332   :  { %870 = vsyncpa [#allocation6], 1 }
 0x333   :  { %871 = vsyncpa [#allocation9], 1 }
 0x334   :  { %872 = vsyncpa [#allocation12], 1 }
 0x335   :  { %873 = vsyncpa [#allocation4], 1 }
 0x336   :  { %875 = vsyncpa [#allocation4 + $0x1], 1 }
 0x337   :  { %876 = vsyncpa [#allocation15], 1 }
 0x338   :  { %878 = vsyncpa [#allocation15 + $0x1], 1 }

</bundles_post_ra>
